<compile_context>
chip_gen: v6e
topology: v6e:2x2x1
jax: 0.10.0
libtpu: 0.0.40
codegen_flags: <defaults>
</compile_context>

<pallas_src>
import jax
import jax.numpy as jnp
from jax.experimental import pallas as pl
from jax.experimental.pallas import tpu as pltpu


def fusion_kernel(x_ref, w1_ref, b1_ref, w2_ref, b2_ref, o_ref):
    # fc1: (TILE_B, Dp) bf16 @ (Dp, H) bf16 -> f32 accumulate on the MXU.
    h = jnp.dot(x_ref[...], w1_ref[...], preferred_element_type=jnp.float32)
    # Bias + ReLU in f32 on the VPU.
    h = jnp.maximum(h + b1_ref[...], 0.0)                       # (TILE_B, H)

    # fc2 (out_features == 1): elementwise scale by the w2 row, then an XLU
    # transpose + sublane reduction.  Avoids a degenerate N=1 MXU matmul and
    # directly produces a lane-dense (1, TILE_B) result.
    hw = h * w2_ref[...]                                        # (TILE_B, H)
    y = jnp.sum(jnp.transpose(hw), axis=0, keepdims=True)       # (1, TILE_B)
    y = y + b2_ref[0, 0]                                        # b2 scalar from SMEM

    # Sigmoid: exp and approx reciprocal both land on the EUP slot.
    o_ref[...] = pl.reciprocal(1.0 + jnp.exp(-y), approx=True)


def _round_up(n, m):
    return (n + m - 1) // m * m


def fusion_forward(x, w1, b1, w2, b2, *, tile_b_max=512):
    """x: (B, D) f32; w1: (D, H); b1: (1, H); w2: (H, 1); b2: (1, 1)."""
    B, D = x.shape
    H = w1.shape[1]

    # 128-align the feature dim and pick a batch tile (multiple of 128).
    D_pad = _round_up(D, 128)
    tile_b = min(tile_b_max, _round_up(B, 128))
    B_pad = _round_up(B, tile_b)
    grid = (B_pad // tile_b,)

    # Zero-pad and narrow the matmul operands to bf16 (f32 accumulation in-kernel).
    x_p = jnp.zeros((B_pad, D_pad), jnp.bfloat16).at[:B, :D].set(
        x.astype(jnp.bfloat16))
    w1_p = jnp.zeros((D_pad, H), jnp.bfloat16).at[:D, :].set(
        w1.astype(jnp.bfloat16))
    b1_r = jnp.asarray(b1, jnp.float32).reshape(1, H)
    w2_r = jnp.asarray(w2, jnp.float32).reshape(1, H)   # w2 as a row vector
    b2_s = jnp.asarray(b2, jnp.float32).reshape(1, 1)

    out = pl.pallas_call(
        fusion_kernel,
        out_shape=jax.ShapeDtypeStruct((1, B_pad), jnp.float32),
        grid=grid,
        in_specs=[
            # x: tiled along batch.
            pl.BlockSpec((tile_b, D_pad), lambda i: (i, 0)),
            # Weights / b1 / w2 row: constant block index -> stay resident in VMEM.
            pl.BlockSpec((D_pad, H), lambda i: (0, 0)),
            pl.BlockSpec((1, H), lambda i: (0, 0)),
            pl.BlockSpec((1, H), lambda i: (0, 0)),
            # b2: scalar in SMEM, no VMEM tile / DMA.
            pl.BlockSpec(memory_space=pltpu.MemorySpace.SMEM),
        ],
        # Lane-dense output: batch lives on the lane axis.
        out_specs=pl.BlockSpec((1, tile_b), lambda i: (0, i)),
        compiler_params=pltpu.CompilerParams(
            dimension_semantics=("parallel",)),
    )(x_p, w1_p, b1_r, w2_r, b2_s)

    # (1, B_pad) -> (B, 1), dropping batch padding.
    return out.reshape(B_pad, 1)[:B]


def init_params(key, input_dim=776, hidden_dim=32):
    # Deterministic init mimicking PyTorch's default U(-1/sqrt(fan_in), 1/sqrt(fan_in)).
    k1, k2, k3, k4 = jax.random.split(key, 4)
    bound1 = 1.0 / jnp.sqrt(input_dim)
    bound2 = 1.0 / jnp.sqrt(hidden_dim)
    w1 = jax.random.uniform(k1, (input_dim, hidden_dim), jnp.float32, -bound1, bound1)
    b1 = jax.random.uniform(k2, (1, hidden_dim), jnp.float32, -bound1, bound1)
    w2 = jax.random.uniform(k3, (hidden_dim, 1), jnp.float32, -bound2, bound2)
    b2 = jax.random.uniform(k4, (1, 1), jnp.float32, -bound2, bound2)
    return w1, b1, w2, b2


if __name__ == "__main__":
    key = jax.random.PRNGKey(0)
    kx, kp = jax.random.split(key)

    batch, input_dim, hidden_dim = 8, 776, 32
    x = jax.random.normal(kx, (batch, input_dim), dtype=jnp.float32)
    w1, b1, w2, b2 = init_params(kp, input_dim, hidden_dim)

    out = jax.block_until_ready(fusion_forward(x, w1, b1, w2, b2))

    # Reference check in plain JAX (f32 reference; bf16 matmul inputs -> loose tol).
    ref = jax.nn.sigmoid(jnp.maximum(x @ w1 + b1, 0.0) @ w2 + b2)
    assert out.shape == (batch, 1)
    assert jnp.allclose(out, ref, atol=1e-2), "mismatch vs reference"

    print("KERNEL_OK")
</pallas_src>

<mosaic_0001>
module attributes {stable_mosaic.version = 11 : i64} {
  func.func @fusion_kernel(%arg0: i32, %arg1: memref<128x896xbf16, #tpu.memory_space<vmem>>, %arg2: memref<896x32xbf16, #tpu.memory_space<vmem>>, %arg3: memref<1x32xf32, #tpu.memory_space<vmem>>, %arg4: memref<1x32xf32, #tpu.memory_space<vmem>>, %arg5: memref<1x1xf32, #tpu.memory_space<smem>>, %arg6: memref<1x128xf32, #tpu.memory_space<vmem>>) attributes {dimension_semantics = [#tpu.dimension_semantics<parallel>], iteration_bounds = array<i64: 1>, scalar_prefetch = 0 : i64, scratch_operands = 0 : i64, tpu.core_type = #tpu.core_type<tc>, window_params = [{transform_indices = @transform_0, window_bounds = array<i64: 128, 896>}, {pipeline_mode = #tpu.pipeline_mode<synchronous>, transform_indices = @transform_1, window_bounds = array<i64: 896, 32>}, {pipeline_mode = #tpu.pipeline_mode<synchronous>, transform_indices = @transform_2, window_bounds = array<i64: 1, 32>}, {pipeline_mode = #tpu.pipeline_mode<synchronous>, transform_indices = @transform_3, window_bounds = array<i64: 1, 32>}, {transform_indices = @transform_4, window_bounds = array<i64: 1, 1>}, {transform_indices = @transform_5, window_bounds = array<i64: 1, 128>}]} {
    %c0 = arith.constant 0 : index
    %c0_0 = arith.constant 0 : index
    %0 = vector.load %arg1[%c0, %c0_0] : memref<128x896xbf16, #tpu.memory_space<vmem>>, vector<128x896xbf16>
    %c0_1 = arith.constant 0 : index
    %c0_2 = arith.constant 0 : index
    %1 = vector.load %arg2[%c0_1, %c0_2] : memref<896x32xbf16, #tpu.memory_space<vmem>>, vector<896x32xbf16>
    %cst = arith.constant dense<0.000000e+00> : vector<128x32xf32>
    %2 = tpu.matmul %0, %1, %cst {dimension_numbers = #tpu.dot_dimension_numbers<[1], [0], [0], [1], [0, 0, 1, 1], [], []>} : vector<128x896xbf16>, vector<896x32xbf16>, vector<128x32xf32> -> vector<128x32xf32>
    %c0_3 = arith.constant 0 : index
    %c0_4 = arith.constant 0 : index
    %3 = vector.load %arg3[%c0_3, %c0_4] : memref<1x32xf32, #tpu.memory_space<vmem>>, vector<1x32xf32>
    %4 = vector.broadcast %3 : vector<1x32xf32> to vector<128x32xf32>
    %5 = arith.addf %2, %4 : vector<128x32xf32>
    %cst_5 = arith.constant 0.000000e+00 : f32
    %6 = vector.broadcast %cst_5 : f32 to vector<128x32xf32>
    %7 = arith.maximumf %5, %6 : vector<128x32xf32>
    %c0_6 = arith.constant 0 : index
    %c0_7 = arith.constant 0 : index
    %8 = vector.load %arg4[%c0_6, %c0_7] : memref<1x32xf32, #tpu.memory_space<vmem>>, vector<1x32xf32>
    %9 = vector.broadcast %8 : vector<1x32xf32> to vector<128x32xf32>
    %10 = arith.mulf %7, %9 : vector<128x32xf32>
    %11 = tpu.transpose %10, [1, 0] : vector<128x32xf32> -> vector<32x128xf32>
    %cst_8 = arith.constant dense<0.000000e+00> : vector<128xf32>
    %12 = vector.multi_reduction <add>, %11, %cst_8 [0] : vector<32x128xf32> to vector<128xf32>
    %13 = vector.shape_cast %12 : vector<128xf32> to vector<1x128xf32>
    %c0_9 = arith.constant 0 : index
    %c0_10 = arith.constant 0 : index
    %14 = memref.load %arg5[%c0_9, %c0_10] : memref<1x1xf32, #tpu.memory_space<smem>>
    %15 = vector.broadcast %14 : f32 to vector<1x128xf32>
    %16 = arith.addf %13, %15 : vector<1x128xf32>
    %cst_11 = arith.constant 0.000000e+00 : f32
    %17 = vector.broadcast %cst_11 : f32 to vector<1x128xf32>
    %18 = arith.subf %17, %16 : vector<1x128xf32>
    %19 = math.exp %18 : vector<1x128xf32>
    %cst_12 = arith.constant 1.000000e+00 : f32
    %20 = vector.broadcast %cst_12 : f32 to vector<1x128xf32>
    %21 = arith.addf %20, %19 : vector<1x128xf32>
    %22 = tpu.reciprocal %21 {approx = true} : vector<1x128xf32> -> vector<1x128xf32>
    %c0_13 = arith.constant 0 : index
    %c0_14 = arith.constant 0 : index
    %23 = vector.load %arg6[%c0_13, %c0_14] : memref<1x128xf32, #tpu.memory_space<vmem>>, vector<1x128xf32>
    tpu.vector_store %arg6[%c0_13, %c0_14], %22 {strides = array<i32>} : memref<1x128xf32, #tpu.memory_space<vmem>>, vector<1x128xf32>,
    return
  }
  func.func @transform_0(%arg0: i32) -> (i32, i32) {
    %c0_i32 = arith.constant 0 : i32
    %c0_i32_0 = arith.constant 0 : i32
    return %arg0, %c0_i32 : i32, i32
  }
  func.func @transform_1(%arg0: i32) -> (i32, i32) {
    %c0_i32 = arith.constant 0 : i32
    %c0_i32_0 = arith.constant 0 : i32
    %c0_i32_1 = arith.constant 0 : i32
    return %c0_i32, %c0_i32_0 : i32, i32
  }
  func.func @transform_2(%arg0: i32) -> (i32, i32) {
    %c0_i32 = arith.constant 0 : i32
    %c0_i32_0 = arith.constant 0 : i32
    %c0_i32_1 = arith.constant 0 : i32
    return %c0_i32, %c0_i32_0 : i32, i32
  }
  func.func @transform_3(%arg0: i32) -> (i32, i32) {
    %c0_i32 = arith.constant 0 : i32
    %c0_i32_0 = arith.constant 0 : i32
    %c0_i32_1 = arith.constant 0 : i32
    return %c0_i32, %c0_i32_0 : i32, i32
  }
  func.func @transform_4(%arg0: i32) -> (i32, i32) {
    %c0_i32 = arith.constant 0 : i32
    %c0_i32_0 = arith.constant 0 : i32
    %c0_i32_1 = arith.constant 0 : i32
    return %c0_i32, %c0_i32_0 : i32, i32
  }
  func.func @transform_5(%arg0: i32) -> (i32, i32) {
    %c0_i32 = arith.constant 0 : i32
    %c0_i32_0 = arith.constant 0 : i32
    return %c0_i32, %arg0 : i32, i32
  }
}

</mosaic_0001>

<bundles_post_ra>
// kernel: tpu_custom_call.1
= control target key start
LH: loop header
LB: loop body
LE: loop exit
PB: predicated region body
PF: predicated region fallthrough
CT: control target
= control target key end

     0   :  { %s2433_s0 = inlined_call_operand.vmem [shape: bf16[128,896], index: 0, kind: input, shape index: {}]   ;;  %s2434_s1 = inlined_call_operand.vmem [shape: bf16[896,32], index: 1, kind: input, shape index: {}]   ;;  %s2435_s2 = inlined_call_operand.vmem [shape: f32[1,32], index: 2, kind: input, shape index: {}]   ;;  %s2436_s3 = inlined_call_operand.vmem [shape: f32[1,32], index: 3, kind: input, shape index: {}]   ;;  %s2437_s4 = inlined_call_operand.<no memory space> [shape: f32[1,1], index: 4, kind: input, shape index: {}]   ;;  %s2438_s5 = inlined_call_operand.hbm [shape: f32[1,128], index: 5, kind: output, shape index: {}]  }
   0x1   :  { %v1676_v0 = vld [vmem:[%s2434_s1 + $0x78] sm:$0xff]   ;;  %v1680_v4 = vld [vmem:[%s2434_s1 + $0x70] sm:$0xff]   ;;  %v1684_v8 = vld [vmem:[%s2434_s1 + $0x68] sm:$0xff]  }
   0x2   :  { %v1677_v1 = vld [vmem:[%s2434_s1 + $0xf8] sm:$0xff]   ;;  %1435 = vmatprep.subr.bf16.mxu0 %v1676_v0  ;;  %v1681_v5 = vld [vmem:[%s2434_s1 + $0xf0] sm:$0xff]   ;;  %v1685_v9 = vld [vmem:[%s2434_s1 + $0xe8] sm:$0xff]  }
   0x3   :  { %v1678_v2 = vld [vmem:[%s2434_s1 + $0x38] sm:$0xff]   ;;  %1499 = vmatprep.subr.bf16.mxu1 %v1677_v1  ;;  %v1682_v6 = vld [vmem:[%s2434_s1 + $0x30] sm:$0xff]   ;;  %v1686_v10 = vld [vmem:[%s2434_s1 + $0x28] sm:$0xff]  }
   0x4   :  { %v1679_v3 = vld [vmem:[%s2434_s1 + $0xb8] sm:$0xff]   ;;  %1436 = vmatpush3.bf16.msra.mxu0 %v1678_v2  ;;  %v1683_v7 = vld [vmem:[%s2434_s1 + $0xb0] sm:$0xff]   ;;  %v1687_v11 = vld [vmem:[%s2434_s1 + $0xa8] sm:$0xff]  }
   0x5   :  { %1500 = vmatpush3.bf16.msra.mxu1 %v1679_v3  ;;  %1437 = vmatprep.subr.bf16.mxu0 %v1680_v4  ;;  %v1688_v12 = vld [vmem:[%s2434_s1 + $0x60] sm:$0xff]   ;;  %v1692_v16 = vld [vmem:[%s2434_s1 + $0x58] sm:$0xff]   ;;  %v1696_v20 = vld [vmem:[%s2434_s1 + $0x50] sm:$0xff]  }
   0x6   :  { %1501 = vmatprep.subr.bf16.mxu1 %v1681_v5  ;;  %v1689_v13 = vld [vmem:[%s2434_s1 + $0xe0] sm:$0xff]   ;;  %v1693_v17 = vld [vmem:[%s2434_s1 + $0xd8] sm:$0xff]   ;;  %v1697_v21 = vld [vmem:[%s2434_s1 + $0xd0] sm:$0xff]  }
   0x7   :  { %v1690_v14 = vld [vmem:[%s2434_s1 + $0x20] sm:$0xff]   ;;  %v1694_v18 = vld [vmem:[%s2434_s1 + $0x18] sm:$0xff]   ;;  %v1698_v22 = vld [vmem:[%s2434_s1 + $0x10] sm:$0xff]  }
   0x8   :  { %1438 = vmatpush3.bf16.msra.mxu0 %v1682_v6  ;;  %v1691_v15 = vld [vmem:[%s2434_s1 + $0xa0] sm:$0xff]   ;;  %v1695_v19 = vld [vmem:[%s2434_s1 + $0x98] sm:$0xff]   ;;  %v1699_v23 = vld [vmem:[%s2434_s1 + $0x90] sm:$0xff]  }
   0x9   :  { %1502 = vmatpush3.bf16.msra.mxu1 %v1683_v7  ;;  %1439 = vmatprep.subr.bf16.mxu0 %v1684_v8  ;;  %v1700_v24 = vld [vmem:[%s2434_s1 + $0x48] sm:$0xff]   ;;  %v1704_v28 = vld [vmem:[%s2434_s1 + $0x40] sm:$0xff]   ;;  %v1714_v36 = vld [vmem:[%s2434_s1 + $0x178] sm:$0xff]  }
   0xa   :  { %1503 = vmatprep.subr.bf16.mxu1 %v1685_v9  ;;  %v1701_v25 = vld [vmem:[%s2434_s1 + $0xc8] sm:$0xff]   ;;  %v1705_v29 = vld [vmem:[%s2434_s1 + $0xc0] sm:$0xff]   ;;  %v1715_v37 = vld [vmem:[%s2434_s1 + $0x138] sm:$0xff]  }
   0xb   :  { %v1702_v26 = vld [vmem:[%s2434_s1 + $0x8] sm:$0xff]   ;;  %v1706_v30 = vld [vmem:[%s2434_s1] sm:$0xff]   ;;  %v1716_v38 = vld [vmem:[%s2434_s1 + $0x1b8] sm:$0xff]  }
   0xc   :  { %1440 = vmatpush3.bf16.msra.mxu0 %v1686_v10  ;;  %v1703_v27 = vld [vmem:[%s2434_s1 + $0x88] sm:$0xff]   ;;  %v1707_v31 = vld [vmem:[%s2434_s1 + $0x80] sm:$0xff]   ;;  %v1717_v39 = vld [vmem:[%s2433_s0 + $0x3c] ss:$28 sps:$4 sm:$0xff]  }
   0xd   :  { %1504 = vmatpush3.bf16.msra.mxu1 %v1687_v11  ;;  %1441 = vmatprep.subr.bf16.mxu0 %v1688_v12  ;;  %v1708_v32 = vld [vmem:[%s2433_s0] ss:$28 sps:$4 sm:$0xff]   ;;  %v1711_v34 = vld [vmem:[%s2433_s0 + $0x8] ss:$28 sps:$4 sm:$0xff]   ;;  %v1721_v41 = vld [vmem:[%s2433_s0 + $0x38] ss:$28 sps:$4 sm:$0xff]  }
   0xe   :  { %1505 = vmatprep.subr.bf16.mxu1 %v1689_v13  ;;  %v1710_v33 = vld [vmem:[%s2433_s0 + $0x4] ss:$28 sps:$4 sm:$0xff]   ;;  %v1713_v35 = vld [vmem:[%s2433_s0 + $0xc] ss:$28 sps:$4 sm:$0xff]   ;;  %v1723_v43 = vld [vmem:[%s2434_s1 + $0x170] sm:$0xff]  }
   0xf   :  { %862 = vmatprep.mubr.bf16.mxu0 %v1710_v33  ;;  %959 = vmatprep.mubr.bf16.mxu1 %v1713_v35  ;;  %v1719_v40 = vld [vmem:[%s2433_s0 + $0x44] ss:$28 sps:$4 sm:$0xff]   ;;  %v1724_v44 = vld [vmem:[%s2434_s1 + $0x130] sm:$0xff]   ;;  %v1728_v47 = vld [vmem:[%s2433_s0 + $0x7c] ss:$28 sps:$4 sm:$0xff]  }
  0x10   :  { %1442 = vmatpush3.bf16.msra.mxu0 %v1690_v14  ;;  %v1722_v42 = vld [vmem:[%s2433_s0 + $0x40] ss:$28 sps:$4 sm:$0xff]   ;;  %v1725_v45 = vld [vmem:[%s2434_s1 + $0x1b0] sm:$0xff]   ;;  %v1732_v49 = vld [vmem:[%s2434_s1 + $0x168] sm:$0xff]  }
  0x11   :  { %1506 = vmatpush3.bf16.msra.mxu1 %v1691_v15  ;;  %1443 = vmatprep.subr.bf16.mxu0 %v1692_v16  ;;  %v1726_v46 = vld [vmem:[%s2433_s0 + $0x74] ss:$28 sps:$4 sm:$0xff]   ;;  %v1733_v51 = vld [vmem:[%s2434_s1 + $0x128] sm:$0xff]   ;;  %v1741_v55 = vld [vmem:[%s2434_s1 + $0x160] sm:$0xff]  }
  0x12   :  { %1507 = vmatprep.subr.bf16.mxu1 %v1693_v17  ;;  %v1730_v48 = vld [vmem:[%s2433_s0 + $0x70] ss:$28 sps:$4 sm:$0xff]   ;;  %v1731_v50 = vld [vmem:[%s2433_s0 + $0x78] ss:$28 sps:$4 sm:$0xff]   ;;  %v1742_v56 = vld [vmem:[%s2434_s1 + $0x120] sm:$0xff]  }
  0x13   :  { %v1734_v52 = vld [vmem:[%s2434_s1 + $0x1a8] sm:$0xff]   ;;  %v1737_v54 = vld [vmem:[%s2433_s0 + $0xb4] ss:$28 sps:$4 sm:$0xff]   ;;  %v1743_v57 = vld [vmem:[%s2434_s1 + $0x1a0] sm:$0xff]  }
  0x14   :  { %1444 = vmatpush3.bf16.msra.mxu0 %v1694_v18  ;;  %v1735_v53 = vld [vmem:[%s2433_s0 + $0xac] ss:$28 sps:$4 sm:$0xff]   ;;  %v1744_v60 = vld [vmem:[%s2433_s0 + $0xe4] ss:$28 sps:$4 sm:$0xff]   ;;  %v1750_v62 = vld [vmem:[%s2434_s1 + $0x158] sm:$0xff]  }
  0x15   :  { %1508 = vmatpush3.bf16.msra.mxu1 %v1695_v19  ;;  %1445 = vmatprep.subr.bf16.mxu0 %v1696_v20  ;;  %v1739_v58 = vld [vmem:[%s2433_s0 + $0xa8] ss:$28 sps:$4 sm:$0xff]   ;;  %v1740_v59 = vld [vmem:[%s2433_s0 + $0xb0] ss:$28 sps:$4 sm:$0xff]   ;;  %v1751_v63 = vld [vmem:[%s2434_s1 + $0x118] sm:$0xff]  }
  0x16   :  { %1509 = vmatprep.subr.bf16.mxu1 %v1697_v21  ;;  %v1746_v61 = vld [vmem:[%s2433_s0 + $0xec] ss:$28 sps:$4 sm:$0xff]   ;;  %v1752_v0 = vld [vmem:[%s2434_s1 + $0x198] sm:$0xff]   ;;  %v1759_v4 = vld [vmem:[%s2434_s1 + $0x150] sm:$0xff]  }
  0x17   :  { %v1748_v1 = vld [vmem:[%s2433_s0 + $0xe0] ss:$28 sps:$4 sm:$0xff]   ;;  %v1749_v2 = vld [vmem:[%s2433_s0 + $0xe8] ss:$28 sps:$4 sm:$0xff]   ;;  %v1760_v5 = vld [vmem:[%s2434_s1 + $0x110] sm:$0xff]  }
  0x18   :  { %1446 = vmatpush3.bf16.msra.mxu0 %v1698_v22  ;;  %v1753_v3 = vld [vmem:[%s2433_s0 + $0x11c] ss:$28 sps:$4 sm:$0xff]   ;;  %v1761_v6 = vld [vmem:[%s2434_s1 + $0x190] sm:$0xff]   ;;  %v1755_v7 = vld [vmem:[%s2433_s0 + $0x124] ss:$28 sps:$4 sm:$0xff]  }
  0x19   :  { %1510 = vmatpush3.bf16.msra.mxu1 %v1699_v23  ;;  %1447 = vmatprep.subr.bf16.mxu0 %v1700_v24  ;;  %v1768_v8 = vld [vmem:[%s2434_s1 + $0x148] sm:$0xff]   ;;  %v1757_v11 = vld [vmem:[%s2433_s0 + $0x118] ss:$28 sps:$4 sm:$0xff]   ;;  %v1758_v12 = vld [vmem:[%s2433_s0 + $0x120] ss:$28 sps:$4 sm:$0xff]  }
  0x1a   :  { %1511 = vmatprep.subr.bf16.mxu1 %v1701_v25  ;;  %v1769_v9 = vld [vmem:[%s2434_s1 + $0x108] sm:$0xff]   ;;  %v1762_v13 = vld [vmem:[%s2433_s0 + $0x154] ss:$28 sps:$4 sm:$0xff]   ;;  %v1764_v14 = vld [vmem:[%s2433_s0 + $0x15c] ss:$28 sps:$4 sm:$0xff]  }
  0x1b   :  { %v1770_v10 = vld [vmem:[%s2434_s1 + $0x188] sm:$0xff]   ;;  %v1777_v15 = vld [vmem:[%s2434_s1 + $0x140] sm:$0xff]   ;;  %v1767_v19 = vld [vmem:[%s2433_s0 + $0x158] ss:$28 sps:$4 sm:$0xff]  }
  0x1c   :  { %1448 = vmatpush3.bf16.msra.mxu0 %v1702_v26  ;;  %v1778_v16 = vld [vmem:[%s2434_s1 + $0x100] sm:$0xff]   ;;  %v1766_v18 = vld [vmem:[%s2433_s0 + $0x150] ss:$28 sps:$4 sm:$0xff]   ;;  %v1783_v25 = vld [vmem:[%s2433_s0 + $0x18] ss:$28 sps:$4 sm:$0xff]  }
  0x1d   :  { %1512 = vmatpush3.bf16.msra.mxu1 %v1703_v27  ;;  %1449 = vmatprep.subr.bf16.mxu0 %v1704_v28  ;;  %v1779_v17 = vld [vmem:[%s2434_s1 + $0x180] sm:$0xff]   ;;  %v1771_v20 = vld [vmem:[%s2433_s0 + $0x18c] ss:$28 sps:$4 sm:$0xff]   ;;  %v1773_v21 = vld [vmem:[%s2433_s0 + $0x194] ss:$28 sps:$4 sm:$0xff]  }
  0x1e   :  { %1513 = vmatprep.subr.bf16.mxu1 %v1705_v29  ;;  %v1775_v22 = vld [vmem:[%s2433_s0 + $0x188] ss:$28 sps:$4 sm:$0xff]   ;;  %v1776_v23 = vld [vmem:[%s2433_s0 + $0x190] ss:$28 sps:$4 sm:$0xff]  }
  0x1f   :  { %v1782_v24 = vld [vmem:[%s2433_s0 + $0x14] ss:$28 sps:$4 sm:$0xff]  }
  0x20   :  { %1450 = vmatpush3.bf16.msra.mxu0 %v1706_v30  ;;  %v1780_v26 = vld [vmem:[%s2433_s0 + $0x10] ss:$28 sps:$4 sm:$0xff]  }
  0x21   :  { %1514 = vmatpush3.bf16.msra.mxu1 %v1707_v31  ;;  %1563 = vmatprep.subr.bf16.mxu0 %v1714_v36 }
  0x22   :  { %1643 = vmatprep.subr.bf16.mxu1 %v1716_v38 }
  0x23   :  { %863 = vmatmul.mubr.bf16.vlgmr.msra.gmra.mxu0 %v1708_v32 }
  0x24   :  { %960 = vmatmul.mubr.bf16.vlgmr.msra.gmra.mxu1 %v1711_v34  ;;  %1564 = vmatpush3.bf16.msra.mxu0 %v1715_v37 }
  0x25   :  { %1644 = vmatpush3.bf16.msra.mxu1 %v1716_v38  ;;  %870 = vmatprep.mubr.bf16.mxu0 %v1717_v39 }
  0x26   :  { %967 = vmatprep.mubr.bf16.mxu1 %v1719_v40  ;;  %1565 = vmatprep.subr.bf16.mxu0 %v1723_v43 }
  0x27   :  { %1645 = vmatprep.subr.bf16.mxu1 %v1725_v45 }
  0x28   :  { %1566 = vmatpush3.bf16.msra.mxu0 %v1724_v44 }
  0x29   :  { %1646 = vmatpush3.bf16.msra.mxu1 %v1725_v45  ;;  %1567 = vmatprep.subr.bf16.mxu0 %v1732_v49 }
  0x2a   :  { %1647 = vmatprep.subr.bf16.mxu1 %v1734_v52 }
  0x2b   :  { %871 = vmatmul.mubr.bf16.gmra.mxu0 %v1721_v41 }
  0x2c   :  { %968 = vmatmul.mubr.bf16.gmra.mxu1 %v1722_v42  ;;  %878 = vmatprep.mubr.bf16.mxu0 %v1726_v46 }
  0x2d   :  { %975 = vmatprep.mubr.bf16.mxu1 %v1728_v47  ;;  %1568 = vmatpush3.bf16.msra.mxu0 %v1733_v51 }
  0x2e   :  { %1648 = vmatpush3.bf16.msra.mxu1 %v1734_v52  ;;  %1569 = vmatprep.subr.bf16.mxu0 %v1741_v55 }
  0x2f   :  { %1649 = vmatprep.subr.bf16.mxu1 %v1743_v57 }
  0x31   :  { %1570 = vmatpush3.bf16.msra.mxu0 %v1742_v56 }
  0x32   :  { %1650 = vmatpush3.bf16.msra.mxu1 %v1743_v57  ;;  %1571 = vmatprep.subr.bf16.mxu0 %v1750_v62 }
  0x33   :  { %879 = vmatmul.mubr.bf16.gmra.mxu0 %v1730_v48  ;;  %1651 = vmatprep.subr.bf16.mxu1 %v1752_v0 }
  0x34   :  { %976 = vmatmul.mubr.bf16.gmra.mxu1 %v1731_v50  ;;  %886 = vmatprep.mubr.bf16.mxu0 %v1735_v53 }
  0x35   :  { %983 = vmatprep.mubr.bf16.mxu1 %v1737_v54  ;;  %1572 = vmatpush3.bf16.msra.mxu0 %v1751_v63 }
  0x36   :  { %1652 = vmatpush3.bf16.msra.mxu1 %v1752_v0  ;;  %1573 = vmatprep.subr.bf16.mxu0 %v1759_v4 }
  0x37   :  { %1653 = vmatprep.subr.bf16.mxu1 %v1761_v6 }
  0x39   :  { %1574 = vmatpush3.bf16.msra.mxu0 %v1760_v5 }
  0x3a   :  { %1654 = vmatpush3.bf16.msra.mxu1 %v1761_v6  ;;  %1575 = vmatprep.subr.bf16.mxu0 %v1768_v8 }
  0x3b   :  { %887 = vmatmul.mubr.bf16.gmra.mxu0 %v1739_v58  ;;  %1655 = vmatprep.subr.bf16.mxu1 %v1770_v10 }
  0x3c   :  { %984 = vmatmul.mubr.bf16.gmra.mxu1 %v1740_v59  ;;  %894 = vmatprep.mubr.bf16.mxu0 %v1744_v60 }
  0x3d   :  { %991 = vmatprep.mubr.bf16.mxu1 %v1746_v61  ;;  %1576 = vmatpush3.bf16.msra.mxu0 %v1769_v9 }
  0x3e   :  { %1656 = vmatpush3.bf16.msra.mxu1 %v1770_v10  ;;  %1577 = vmatprep.subr.bf16.mxu0 %v1777_v15 }
  0x3f   :  { %1657 = vmatprep.subr.bf16.mxu1 %v1779_v17 }
  0x41   :  { %1578 = vmatpush3.bf16.msra.mxu0 %v1778_v16 }
  0x42   :  { %1658 = vmatpush3.bf16.msra.mxu1 %v1779_v17 }
  0x43   :  { %895 = vmatmul.mubr.bf16.gmra.mxu0 %v1748_v1 }
  0x44   :  { %992 = vmatmul.mubr.bf16.gmra.mxu1 %v1749_v2  ;;  %902 = vmatprep.mubr.bf16.mxu0 %v1753_v3 }
  0x45   :  { %999 = vmatprep.mubr.bf16.mxu1 %v1755_v7 }
  0x4b   :  { %903 = vmatmul.mubr.bf16.gmra.mxu0 %v1757_v11 }
  0x4c   :  { %1000 = vmatmul.mubr.bf16.gmra.mxu1 %v1758_v12  ;;  %910 = vmatprep.mubr.bf16.mxu0 %v1762_v13 }
  0x4d   :  { %1007 = vmatprep.mubr.bf16.mxu1 %v1764_v14 }
  0x53   :  { %911 = vmatmul.mubr.bf16.gmra.mxu0 %v1766_v18 }
  0x54   :  { %1008 = vmatmul.mubr.bf16.gmra.mxu1 %v1767_v19  ;;  %918 = vmatprep.mubr.bf16.mxu0 %v1771_v20 }
  0x55   :  { %1015 = vmatprep.mubr.bf16.mxu1 %v1773_v21 }
  0x5b   :  { %919 = vmatmul.mubr.bf16.gmra.mxu0 %v1775_v22 }
  0x5c   :  { %1016 = vmatmul.mubr.bf16.gmra.mxu1 %v1776_v23  ;;  %1056 = vmatprep.mubr.bf16.mxu0 %v1782_v24 }
  0x5d   :  { %1659 = vmatprep.mubr.bf16.mxu1 %v1783_v25 }
  0x5e   :  { %11 = vsyncpa [#allocation4], 0  ;;  %v1784_v27 = vld [vmem:[%s2433_s0 + $0x50] ss:$28 sps:$4 sm:$0xff]   ;;  %v1788_v29 = vld [vmem:[%s2433_s0 + $0x88] ss:$28 sps:$4 sm:$0xff]  }
  0x5f   :  { %v1785_v28 = vld [vmem:[%s2433_s0 + $0x4c] ss:$28 sps:$4 sm:$0xff]   ;;  %v1789_v31 = vld [vmem:[%s2433_s0 + $0x84] ss:$28 sps:$4 sm:$0xff]   ;;  %v1796_v33 = vld [vmem:[%s2433_s0 + $0xf8] ss:$28 sps:$4 sm:$0xff]  }
  0x60   :  { %v1787_v30 = vld [vmem:[%s2433_s0 + $0x48] ss:$28 sps:$4 sm:$0xff]   ;;  %v1791_v32 = vld [vmem:[%s2433_s0 + $0xc0] ss:$28 sps:$4 sm:$0xff]   ;;  %v1799_v36 = vld [vmem:[%s2433_s0 + $0x130] ss:$28 sps:$4 sm:$0xff]  }
  0x61   :  { %v1792_v34 = vld [vmem:[%s2433_s0 + $0x80] ss:$28 sps:$4 sm:$0xff]   ;;  %v1804_v37 = vld [vmem:[%s2433_s0 + $0x168] ss:$28 sps:$4 sm:$0xff]   ;;  %v1795_v38 = vld [vmem:[%s2433_s0 + $0xb8] ss:$28 sps:$4 sm:$0xff]  }
  0x62   :  { %v1793_v35 = vld [vmem:[%s2433_s0 + $0xbc] ss:$28 sps:$4 sm:$0xff]   ;;  %v1797_v39 = vld [vmem:[%s2433_s0 + $0xf4] ss:$28 sps:$4 sm:$0xff]   ;;  %v1801_v42 = vld [vmem:[%s2433_s0 + $0x12c] ss:$28 sps:$4 sm:$0xff]  }
  0x63   :  { %1057 = vmatmul.mubr.bf16.vlgmr.msra.gmra.mxu0 %v1780_v26  ;;  %v1807_v40 = vld [vmem:[%s2433_s0 + $0x1a0] ss:$28 sps:$4 sm:$0xff]   ;;  %v1800_v41 = vld [vmem:[%s2433_s0 + $0xf0] ss:$28 sps:$4 sm:$0xff]   ;;  %v1803_v43 = vld [vmem:[%s2433_s0 + $0x128] ss:$28 sps:$4 sm:$0xff]  }
  0x64   :  { %1660 = vmatmul.mubr.bf16.vlgmr.msra.gmra.mxu1 %v1784_v27  ;;  %1064 = vmatprep.mubr.bf16.mxu0 %v1785_v28  ;;  %v1805_v44 = vld [vmem:[%s2433_s0 + $0x164] ss:$28 sps:$4 sm:$0xff]   ;;  %v1809_v46 = vld [vmem:[%s2433_s0 + $0x19c] ss:$28 sps:$4 sm:$0xff]   ;;  %s1838_s17 = smov [#allocation3]  }
  0x65   :  { %1663 = vmatprep.mubr.bf16.mxu1 %v1788_v29  ;;  %v1808_v45 = vld [vmem:[%s2433_s0 + $0x160] ss:$28 sps:$4 sm:$0xff]   ;;  %v1811_v47 = vld [vmem:[%s2433_s0 + $0x198] ss:$28 sps:$4 sm:$0xff]   ;;  %s1313_s18 = sshll.u32 %s1838_s17, 4  ;;  %s1314_s18 = int_to_ptr.vmem [resolvable:$true] %s1313_s18 }
  0x66   :  { %s1816_s19 = scalar_lea.vmem %s1314_s18, 16  ;;  %s1820_s20 = scalar_lea.vmem %s1314_s18, 32 }
  0x67   :  { %p1817_p0 = scmp.ne.s32.totalorder %s1314_s18, %s1816_s19  ;;  %p1821_p1 = scmp.lt.s32.totalorder %s1314_s18, %s1314_s18 }
  0x68   :  { %p1822_p2 = scmp.lt.s32.totalorder %s1820_s20, %s1816_s19 }
  0x6a   :  { %p1823_p3 = por %p1822_p2, %p1821_p1 }
  0x6b   :  { %1065 = vmatmul.mubr.bf16.gmra.mxu0 %v1787_v30 }
  0x6c   :  { %1072 = vmatprep.mubr.bf16.mxu0 %v1789_v31  ;;  %1664 = vmatmul.mubr.bf16.gmra.mxu1 %v1791_v32  ;;  %p1824_p4 = pnand %p1823_p3, %p1817_p0 }
  0x6d   :  { %1667 = vmatprep.mubr.bf16.mxu1 %v1796_v33 }
  0x73   :  { %1073 = vmatmul.mubr.bf16.gmra.mxu0 %v1792_v34 }
  0x74   :  { %1080 = vmatprep.mubr.bf16.mxu0 %v1793_v35  ;;  %1668 = vmatmul.mubr.bf16.gmra.mxu1 %v1799_v36 }
  0x75   :  { %1671 = vmatprep.mubr.bf16.mxu1 %v1804_v37 }
  0x7b   :  { %1081 = vmatmul.mubr.bf16.gmra.mxu0 %v1795_v38 }
  0x7c   :  { %1088 = vmatprep.mubr.bf16.mxu0 %v1797_v39  ;;  %1672 = vmatmul.mubr.bf16.gmra.mxu1 %v1807_v40 }
  0x83   :  { %1089 = vmatmul.mubr.bf16.gmra.mxu0 %v1800_v41 }
  0x84   :  { %1096 = vmatprep.mubr.bf16.mxu0 %v1801_v42 }
  0x8b   :  { %1097 = vmatmul.mubr.bf16.gmra.mxu0 %v1803_v43 }
  0x8c   :  { %1104 = vmatprep.mubr.bf16.mxu0 %v1805_v44 }
  0x93   :  { %1105 = vmatmul.mubr.bf16.gmra.mxu0 %v1808_v45  ;;  %v2320_v45 = vld [vmem:[%s2435_s2] ss:$0 sm:$0xff] }
  0x94   :  { %1112 = vmatprep.mubr.bf16.mxu0 %v1809_v46 }
  0x9b   :  { %1113 = vmatmul.mubr.bf16.gmra.mxu0 %v1811_v47 }
  0xe3   :  { %v1451_v48 = vpop.f32.mrf.mxu0 }
  0xe4   :  { %v2205_v49 = vpop.f32.mrf.mxu1 }
  0xe5   :  { %v1452_v50 = vpop.f32.mrf.mxu0 }
  0xe6   :  { %v2207_v51 = vpop.f32.mrf.mxu1  ;;  %v1453_v43 = vadd.f32 %v1452_v50, %v1451_v48 }
  0xe7   :  { %v2209_v52 = vpop.f32.mrf.mxu0 }
  0xe8   :  { %v2211_v53 = vpop.f32.mrf.mxu1 }
  0xe9   :  { %v1455_v54 = vpop.f32.mrf.mxu0 }
  0xea   :  { %v2213_v55 = vpop.f32.mrf.mxu1  ;;  %v1456_v48 = vadd.f32 %v1455_v54, %v2209_v52 }
  0xeb   :  { %v2215_v56 = vpop.f32.mrf.mxu0 }
  0xec   :  { %v2217_v57 = vpop.f32.mrf.mxu1 }
  0xed   :  { %v1458_v58 = vpop.f32.mrf.mxu0 }
  0xee   :  { %v2219_v59 = vpop.f32.mrf.mxu1 }
  0xef   :  { %v2221_v60 = vpop.f32.mrf.mxu0 }
  0xf0   :  { %v2223_v61 = vpop.f32.mrf.mxu1 }
  0xf1   :  { %v2225_v62 = vpop.f32.mrf.mxu0 }
  0xf2   :  { %v2227_v63 = vpop.f32.mrf.mxu1 }
  0xf3   :  { %v2229_v0 = vpop.f32.mrf.mxu0 }
  0xf4   :  { %v2231_v1 = vpop.f32.mrf.mxu1 }
  0xf5   :  { %v2233_v2 = vpop.f32.mrf.mxu0 }
  0xf6   :  { %v2235_v3 = vpop.f32.mrf.mxu1 }
  0xf7   :  { %v2237_v4 = vpop.f32.mrf.mxu0 }
  0xf8   :  { %v2239_v5 = vpop.f32.mrf.mxu1 }
  0xf9   :  { %v2241_v6 = vpop.f32.mrf.mxu0 }
  0xfa   :  { %v2243_v7 = vpop.f32.mrf.mxu1 }
  0xfb   :  { %v2245_v8 = vpop.f32.mrf.mxu0 }
  0xfc   :  { %v2247_v9 = vpop.f32.mrf.mxu1 }
  0xfd   :  { %v2249_v10 = vpop.f32.mrf.mxu0 }
  0xfe   :  { %v2251_v11 = vpop.f32.mrf.mxu1 }
  0xff   :  { %v2253_v12 = vpop.f32.mrf.mxu0 }
 0x100   :  { %v2255_v13 = vpop.f32.mrf.mxu1 }
 0x101   :  { %v2257_v14 = vpop.f32.mrf.mxu0 }
 0x102   :  { %v2259_v15 = vpop.f32.mrf.mxu1 }
 0x103   :  { %v2261_v16 = vpop.f32.mrf.mxu0 }
 0x104   :  { %v2263_v17 = vpop.f32.mrf.mxu1 }
 0x105   :  { %v2265_v18 = vpop.f32.mrf.mxu0 }
 0x106   :  { %v2267_v19 = vpop.f32.mrf.mxu1 }
 0x107   :  { %v2269_v20 = vpop.f32.mrf.mxu0 }
 0x108   :  { %v2271_v21 = vpop.f32.mrf.mxu1 }
 0x109   :  { %v2273_v22 = vpop.f32.mrf.mxu0 }
 0x10a   :  { %v2275_v23 = vpop.f32.mrf.mxu1 }
 0x10b   :  { %v2277_v24 = vpop.f32.mrf.mxu0 }
 0x10c   :  { %v2279_v25 = vpop.f32.mrf.mxu1 }
 0x10d   :  { %v2281_v26 = vpop.f32.mrf.mxu0 }
 0x10e   :  { %v2283_v27 = vpop.f32.mrf.mxu1 }
 0x10f   :  { %v2285_v28 = vpop.f32.mrf.mxu0 }
 0x110   :  { %v2287_v29 = vpop.f32.mrf.mxu1 }
 0x111   :  { %v2289_v30 = vpop.f32.mrf.mxu0 }
 0x112   :  { %v2291_v31 = vpop.f32.mrf.mxu1 }
 0x113   :  { %v2293_v32 = vpop.f32.mrf.mxu0 }
 0x114   :  { %v2295_v33 = vpop.f32.mrf.mxu1 }
 0x115   :  { %2439 = vst [vmem:[#allocation6_spill] sm:$0xff] %v2295_v33  ;;  %v2297_v34 = vpop.f32.mrf.mxu0 }
 0x116   :  { %v2299_v35 = vpop.f32.mrf.mxu1 }
 0x117   :  { %2440 = vst [vmem:[#allocation7_spill] sm:$0xff] %v2299_v35  ;;  %v2301_v36 = vpop.f32.mrf.mxu0 }
 0x118   :  { %2441 = vst [vmem:[#allocation8_spill] sm:$0xff] %v2301_v36  ;;  %v2303_v37 = vpop.f32.mrf.mxu1 }
 0x119   :  { %2442 = vst [vmem:[#allocation9_spill] sm:$0xff] %v2303_v37  ;;  %v2305_v38 = vpop.f32.mrf.mxu0 }
 0x11a   :  { %2443 = vst [vmem:[#allocation10_spill] sm:$0xff] %v2305_v38  ;;  %v2307_v39 = vpop.f32.mrf.mxu1 }
 0x11b   :  { %2444 = vst [vmem:[#allocation11_spill] sm:$0xff] %v2307_v39  ;;  %v2309_v40 = vpop.f32.mrf.mxu0  ;;  %v865_v39 = vadd.f32 %v1453_v43, %v2320_v45  ;;  %v1520_v43 = vadd.f32 %v2213_v55, %v2211_v53 }
 0x11c   :  { %2445 = vst [vmem:[#allocation12_spill] sm:$0xff] %v2309_v40  ;;  %v2311_v41 = vpop.f32.mrf.mxu1  ;;  %v1459_v40 = vadd.f32 %v1458_v58, %v2215_v56  ;;  %v1462_v56 = vadd.f32 %v2225_v62, %v2221_v60 }
 0x11d   :  { %2446 = vst [vmem:[#allocation13_spill] sm:$0xff] %v2311_v41  ;;  %v2313_v42 = vpop.f32.mrf.mxu0  ;;  %v1517_v41 = vadd.f32 %v2207_v51, %v2205_v49  ;;  %v1523_v51 = vadd.f32 %v2219_v59, %v2217_v57  ;;  %v1465_v57 = vadd.f32 %v2233_v2, %v2229_v0  ;;  %v1529_v0 = vadd.f32 %v2235_v3, %v2231_v1 }
 0x11e   :  { %2447 = vst [vmem:[#allocation14_spill] sm:$0xff] %v2313_v42  ;;  %v2315_v44 = vpop.f32.mrf.mxu1  ;;  %v873_v49 = vadd.f32 %v1459_v40, %v2320_v45  ;;  %v1468_v2 = vadd.f32 %v2241_v6, %v2237_v4  ;;  %v1471_v1 = vadd.f32 %v2249_v10, %v2245_v8 }
 0x11f   :  { %2448 = vst [vmem:[#allocation15_spill] sm:$0xff] %v2315_v44  ;;  %v2322_v46 = vpop.f32.mrf.mxu0  ;;  %v962_v36 = vadd.f32 %v1517_v41, %v865_v39  ;;  %v2346_v41 = vld [vmem:[%s2436_s3] ss:$0 sm:$0xff] }
 0x120   :  { %2449 = vst [vmem:[#allocation16_spill] sm:$0xff] %v2322_v46  ;;  %v2324_v47 = vpop.f32.mrf.mxu1  ;;  %v868_v46 = vadd.f32 %v1456_v48, %v2320_v45  ;;  %v881_v48 = vadd.f32 %v1465_v57, %v2320_v45  ;;  %v889_v10 = vadd.f32 %v1471_v1, %v2320_v45  ;;  %v1483_v1 = vadd.f32 %v2281_v26, %v2277_v24 }
 0x121   :  { %2450 = vst [vmem:[#allocation17_spill] sm:$0xff] %v2324_v47  ;;  %v2326_v37 = vpop.f32.mrf.mxu0  ;;  %v1547_v24 = vadd.f32 %v2283_v27, %v2279_v25  ;;  %v1486_v26 = vadd.f32 %v2289_v30, %v2285_v28  ;;  %v1489_v25 = vadd.f32 %v2297_v34, %v2293_v32 }
 0x122   :  { %2451 = vst [vmem:[#allocation18_spill] sm:$0xff] %v2326_v37  ;;  %v2332_v50 = vpop.f32.mrf.mxu1 }
 0x123   :  { %2452 = vst [vmem:[#allocation19_spill] sm:$0xff] %v2332_v50  ;;  %v1579_v44 = vpop.f32.mrf.mxu0  ;;  %v965_v50 = vadd.f32 %v1520_v43, %v868_v46  ;;  %v913_v34 = vadd.f32 %v1489_v25, %v2320_v45 }
 0x124   :  { %v1661_v42 = vpop.f32.mrf.mxu1 }
 0x125   :  { %v1580_v38 = vpop.f32.mrf.mxu0 }
 0x126   :  { %v1581_v47 = vadd.f32 %v1580_v38, %v1579_v44  ;;  %v1155_v35 = vpop.f32.mrf.mxu1  ;;  %v876_v44 = vadd.f32 %v1462_v56, %v2320_v45 }
 0x127   :  { %v1582_v37 = vpop.f32.mrf.mxu0 }
 0x128   :  { %v1059_v33 = vadd.f32 %v1581_v47, %v962_v36  ;;  %v1662_v52 = vpop.f32.mrf.mxu1  ;;  %v970_v36 = vadd.f32 %v1523_v51, %v873_v49 }
 0x129   :  { %v1583_v54 = vpop.f32.mrf.mxu0 }
 0x12a   :  { %v1156_v58 = vadd.f32 %v1155_v35, %v1059_v33  ;;  %v1584_v39 = vadd.f32 %v1583_v54, %v1582_v37  ;;  %v1158_v59 = vpop.f32.mrf.mxu1  ;;  %v1526_v35 = vadd.f32 %v2227_v63, %v2223_v61 }
 0x12b   :  { %v1585_v38 = vpop.f32.mrf.mxu0 }
 0x12c   :  { %v1218_v53 = vmax.f32 %v1156_v58, 0.0  ;;  %v1062_v55 = vadd.f32 %v1584_v39, %v965_v50  ;;  %v1665_v43 = vpop.f32.mrf.mxu1  ;;  %v973_v49 = vadd.f32 %v1526_v35, %v876_v44  ;;  %v978_v39 = vadd.f32 %v1529_v0, %v881_v48 }
 0x12d   :  { %v1586_v40 = vpop.f32.mrf.mxu0  ;;  %v1535_v44 = vadd.f32 %v2251_v11, %v2247_v9  ;;  %v1477_v9 = vadd.f32 %v2265_v18, %v2261_v16  ;;  %v1541_v16 = vadd.f32 %v2267_v19, %v2263_v17 }
 0x12e   :  { %v1159_v46 = vadd.f32 %v1158_v59, %v1062_v55  ;;  %v1587_v60 = vadd.f32 %v1586_v40, %v1585_v38  ;;  %v1241_v62 = vmul.f32 %v2346_v41, %v1218_v53  ;;  %v884_v38 = vadd.f32 %v1468_v2, %v2320_v45  ;;  %v1171_v53 = vpop.f32.mrf.mxu1 }
 0x12f   :  { %v1588_v33 = vpop.f32.mrf.mxu0  ;;  %v1538_v2 = vadd.f32 %v2259_v15, %v2255_v13 }
 0x130   :  { %v1219_v37 = vmax.f32 %v1159_v46, 0.0  ;;  %v1067_v47 = vadd.f32 %v1587_v60, %v970_v36  ;;  %1257 = vxpose.xlu0.b32.start [1/16] (narrow) %v1241_v62, 32  ;;  %v1532_v36 = vadd.f32 %v2243_v7, %v2239_v5  ;;  %v1474_v46 = vadd.f32 %v2257_v14, %v2253_v12  ;;  %v1666_v60 = vpop.f32.mrf.mxu1 }
 0x131   :  { %v1589_v50 = vpop.f32.mrf.mxu0  ;;  %v986_v12 = vadd.f32 %v1535_v44, %v889_v10 }
 0x132   :  { %v1590_v51 = vadd.f32 %v1589_v50, %v1588_v33  ;;  %v1242_v54 = vmul.f32 %v2346_v41, %v1219_v37  ;;  %v1164_v56 = vadd.f32 %v1661_v42, %v1067_v47  ;;  %v981_v40 = vadd.f32 %v1532_v36, %v884_v38  ;;  %v1174_v11 = vpop.f32.mrf.mxu1 }
 0x133   :  { %v1591_v58 = vpop.f32.mrf.mxu0  ;;  %v892_v37 = vadd.f32 %v1474_v46, %v2320_v45 }
 0x134   :  { %v1070_v61 = vadd.f32 %v1590_v51, %v973_v49  ;;  %1258 = vxpose.xlu0.b32.cont [2/16] (narrow) %v1242_v54, 32  ;;  %v1220_v63 = vmax.f32 %v1164_v56, 0.0  ;;  %v897_v56 = vadd.f32 %v1477_v9, %v2320_v45 }
 0x135   :  { %v1592_v55 = vpop.f32.mrf.mxu0  ;;  %v989_v54 = vadd.f32 %v1538_v2, %v892_v37 }
 0x136   :  { %v1593_v3 = vadd.f32 %v1592_v55, %v1591_v58  ;;  %v1243_v4 = vmul.f32 %v2346_v41, %v1220_v63  ;;  %v1167_v6 = vadd.f32 %v1662_v52, %v1070_v61  ;;  %v1669_v58 = vpop.f32.mrf.mxu1  ;;  %v1480_v61 = vadd.f32 %v2273_v22, %v2269_v20 }
 0x137   :  { %v1594_v42 = vpop.f32.mrf.mxu0  ;;  %v994_v55 = vadd.f32 %v1541_v16, %v897_v56 }
 0x138   :  { %v1075_v57 = vadd.f32 %v1593_v3, %v978_v39  ;;  %1259 = vxpose.xlu0.b32.cont [3/16] (narrow) %v1243_v4, 32  ;;  %v1221_v59 = vmax.f32 %v1167_v6, 0.0  ;;  %v1187_v3 = vpop.f32.mrf.mxu1  ;;  %v900_v17 = vadd.f32 %v1480_v61, %v2320_v45  ;;  %v2458_v61 = vld [vmem:[#allocation14_spill] sm:$0xff] }
 0x139   :  { %v1595_v8 = vpop.f32.mrf.mxu0 }
 0x13a   :  { %v1596_v62 = vadd.f32 %v1595_v8, %v1594_v42  ;;  %v1244_v52 = vmul.f32 %v2346_v41, %v1221_v59  ;;  %v1172_v33 = vadd.f32 %v1171_v53, %v1075_v57  ;;  %v905_v57 = vadd.f32 %v1483_v1, %v2320_v45  ;;  %v1670_v59 = vpop.f32.mrf.mxu1  ;;  %v2459_v1 = vld [vmem:[#allocation9_spill] sm:$0xff] }
 0x13b   :  { %v1597_v5 = vpop.f32.mrf.mxu0 }
 0x13c   :  { %v1078_v7 = vadd.f32 %v1596_v62, %v981_v40  ;;  %1260 = vxpose.xlu0.b32.cont [4/16] (narrow) %v1244_v52, 32  ;;  %v1222_v35 = vmax.f32 %v1172_v33, 0.0  ;;  %v1002_v62 = vadd.f32 %v1547_v24, %v905_v57  ;;  %v908_v52 = vadd.f32 %v1486_v26, %v2320_v45  ;;  %v1190_v33 = vpop.f32.mrf.mxu1  ;;  %v2463_v24 = vld [vmem:[#allocation16_spill] sm:$0xff]  ;;  %v2464_v26 = vld [vmem:[#allocation18_spill] sm:$0xff] }
 0x13d   :  { %v1598_v47 = vpop.f32.mrf.mxu0 }
 0x13e   :  { %v1599_v14 = vadd.f32 %v1598_v47, %v1597_v5  ;;  %v1245_v48 = vmul.f32 %v2346_v41, %v1222_v35  ;;  %v1175_v0 = vadd.f32 %v1174_v11, %v1078_v7  ;;  %v1550_v7 = vadd.f32 %v2291_v31, %v2287_v29  ;;  %v2453_v47 = vld [vmem:[#allocation6_spill] sm:$0xff]  ;;  %v1673_v32 = vpop.f32.mrf.mxu1 }
 0x13f   :  { %v1600_v50 = vpop.f32.mrf.mxu0 }
 0x140   :  { %v1083_v49 = vadd.f32 %v1599_v14, %v986_v12  ;;  %1261 = vxpose.xlu0.b32.cont [5/16] (narrow) %v1245_v48, 32  ;;  %v1223_v51 = vmax.f32 %v1175_v0, 0.0  ;;  %v1005_v11 = vadd.f32 %v1550_v7, %v908_v52  ;;  %v2454_v12 = vld [vmem:[#allocation7_spill] sm:$0xff]  ;;  %v2455_v48 = vld [vmem:[#allocation8_spill] sm:$0xff]  ;;  %v2456_v0 = vld [vmem:[#allocation10_spill] sm:$0xff] }
 0x141   :  { %v1601_v18 = vpop.f32.mrf.mxu0  ;;  %v1553_v14 = vadd.f32 %v2454_v12, %v2453_v47  ;;  %v1492_v2 = vadd.f32 %v2456_v0, %v2455_v48 }
 0x142   :  { %v1602_v63 = vadd.f32 %v1601_v18, %v1600_v50  ;;  %v1246_v39 = vmul.f32 %v2346_v41, %v1223_v51  ;;  %v1180_v38 = vadd.f32 %v1665_v43, %v1083_v49  ;;  %v1544_v43 = vadd.f32 %v2275_v23, %v2271_v21  ;;  %v2457_v18 = vld [vmem:[#allocation12_spill] sm:$0xff] }
 0x143   :  { %v1603_v13 = vpop.f32.mrf.mxu0  ;;  %v916_v16 = vadd.f32 %v1492_v2, %v2320_v45 }
 0x144   :  { %v1086_v15 = vadd.f32 %v1602_v63, %v989_v54  ;;  %1262 = vxpose.xlu0.b32.cont [6/16] (narrow) %v1246_v39, 32  ;;  %v1224_v53 = vmax.f32 %v1180_v38, 0.0  ;;  %v997_v44 = vadd.f32 %v1544_v43, %v900_v17  ;;  %v1495_v63 = vadd.f32 %v2458_v61, %v2457_v18  ;;  %v1203_v39 = vpop.f32.mrf.mxu1  ;;  %v2462_v43 = vld [vmem:[#allocation15_spill] sm:$0xff] }
 0x145   :  { %v1604_v4 = vpop.f32.mrf.mxu0 }
 0x146   :  { %v1605_v19 = vadd.f32 %v1604_v4, %v1603_v13  ;;  %v1247_v6 = vmul.f32 %v2346_v41, %v1224_v53  ;;  %v1183_v20 = vadd.f32 %v1666_v60, %v1086_v15  ;;  %v1010_v13 = vadd.f32 %v1553_v14, %v913_v34 }
 0x147   :  { %v1606_v22 = vpop.f32.mrf.mxu0 }
 0x148   :  { %v1091_v36 = vadd.f32 %v1605_v19, %v994_v55  ;;  %1263 = vxpose.xlu0.b32.cont [7/16] (narrow) %v1247_v6, 32  ;;  %v1225_v42 = vmax.f32 %v1183_v20, 0.0  ;;  %v921_v20 = vadd.f32 %v1495_v63, %v2320_v45 }
 0x149   :  { %v1607_v40 = vpop.f32.mrf.mxu0 }
 0x14a   :  { %v1608_v46 = vadd.f32 %v1607_v40, %v1606_v22  ;;  %v1248_v60 = vmul.f32 %v2346_v41, %v1225_v42  ;;  %v1188_v8 = vadd.f32 %v1187_v3, %v1091_v36  ;;  %v2460_v3 = vld [vmem:[#allocation11_spill] sm:$0xff]  ;;  %v2461_v22 = vld [vmem:[#allocation13_spill] sm:$0xff]  ;;  %v1674_v42 = vpop.f32.mrf.mxu1  ;;  %v1498_v40 = vadd.f32 %v2464_v26, %v2463_v24 }
 0x14b   :  { %v1609_v10 = vpop.f32.mrf.mxu0  ;;  %v1556_v4 = vadd.f32 %v2460_v3, %v2459_v1  ;;  %v1559_v36 = vadd.f32 %v2462_v43, %v2461_v22 }
 0x14c   :  { %v1094_v21 = vadd.f32 %v1608_v46, %v997_v44  ;;  %1264 = vxpose.xlu0.b32.cont [8/16] (narrow) %v1248_v60, 32  ;;  %v1226_v23 = vmax.f32 %v1188_v8, 0.0  ;;  %v924_v52 = vadd.f32 %v1498_v40, %v2320_v45 }
 0x14d   :  { %v1610_v5 = vpop.f32.mrf.mxu0  ;;  %v1013_v6 = vadd.f32 %v1556_v4, %v916_v16 }
 0x14e   :  { %v1611_v27 = vadd.f32 %v1610_v5, %v1609_v10  ;;  %v1249_v28 = vmul.f32 %v2346_v41, %v1226_v23  ;;  %v1191_v30 = vadd.f32 %v1190_v33, %v1094_v21  ;;  %v1018_v21 = vadd.f32 %v1559_v36, %v921_v20  ;;  %v1206_v23 = vpop.f32.mrf.mxu1 }
 0x14f   :  { %v1612_v35 = vpop.f32.mrf.mxu0 }
 0x150   :  { %v1099_v37 = vadd.f32 %v1611_v27, %v1002_v62  ;;  %1265 = vxpose.xlu0.b32.cont [9/16] (narrow) %v1249_v28, 32  ;;  %v1227_v9 = vmax.f32 %v1191_v30, 0.0  ;;  %v2465_v28 = vld [vmem:[#allocation17_spill] sm:$0xff]  ;;  %v2466_v30 = vld [vmem:[#allocation19_spill] sm:$0xff] }
 0x151   :  { %v1613_v50 = vpop.f32.mrf.mxu0  ;;  %v1562_v7 = vadd.f32 %v2466_v30, %v2465_v28 }
 0x152   :  { %v1614_v49 = vadd.f32 %v1613_v50, %v1612_v35  ;;  %v1250_v51 = vmul.f32 %v2346_v41, %v1227_v9  ;;  %v1196_v54 = vadd.f32 %v1669_v58, %v1099_v37 }
 0x153   :  { %v1615_v29 = vpop.f32.mrf.mxu0 }
 0x154   :  { %v1102_v31 = vadd.f32 %v1614_v49, %v1005_v11  ;;  %1266 = vxpose.xlu0.b32.cont [10/16] (narrow) %v1250_v51, 32  ;;  %v1228_v56 = vmax.f32 %v1196_v54, 0.0  ;;  %v1021_v11 = vadd.f32 %v1562_v7, %v924_v52 }
 0x155   :  { %v1616_v38 = vpop.f32.mrf.mxu0 }
 0x156   :  { %v1617_v15 = vadd.f32 %v1616_v38, %v1615_v29  ;;  %v1251_v53 = vmul.f32 %v2346_v41, %v1228_v56  ;;  %v1199_v55 = vadd.f32 %v1670_v59, %v1102_v31  ;;  %v1299_v38 = vstv %s2437_s4 }
 0x157   :  { %v1618_v58 = vpop.f32.mrf.mxu0 }
 0x158   :  { %v1107_v17 = vadd.f32 %v1617_v15, %v1010_v13  ;;  %1267 = vxpose.xlu0.b32.cont [11/16] (narrow) %v1251_v53, 32  ;;  %v1229_v19 = vmax.f32 %v1199_v55, 0.0 }
 0x159   :  { %v1619_v57 = vpop.f32.mrf.mxu0 }
 0x15a   :  { %v1620_v44 = vadd.f32 %v1619_v57, %v1618_v58  ;;  %v1252_v59 = vmul.f32 %v2346_v41, %v1229_v19  ;;  %v1204_v46 = vadd.f32 %v1203_v39, %v1107_v17 }
 0x15b   :  { %v1621_v60 = vpop.f32.mrf.mxu0 }
 0x15c   :  { %v1110_v8 = vadd.f32 %v1620_v44, %v1013_v6  ;;  %1268 = vxpose.xlu0.b32.cont [12/16] (narrow) %v1252_v59, 32  ;;  %v1230_v10 = vmax.f32 %v1204_v46, 0.0 }
 0x15d   :  { %v1622_v62 = vpop.f32.mrf.mxu0 }
 0x15e   :  { %v1623_v33 = vadd.f32 %v1622_v62, %v1621_v60  ;;  %v1253_v5 = vmul.f32 %v2346_v41, %v1230_v10  ;;  %v1207_v25 = vadd.f32 %v1206_v23, %v1110_v8 }
 0x15f   :  { %v1624_v27 = vpop.f32.mrf.mxu0 }
 0x160   :  { %v1115_v35 = vadd.f32 %v1623_v33, %v1018_v21  ;;  %1269 = vxpose.xlu0.b32.cont [13/16] (narrow) %v1253_v5, 32  ;;  %v1231_v37 = vmax.f32 %v1207_v25, 0.0 }
 0x161   :  { %v1625_v9 = vpop.f32.mrf.mxu0 }
 0x162   :  { %v1626_v47 = vadd.f32 %v1625_v9, %v1624_v27  ;;  %v1254_v12 = vmul.f32 %v2346_v41, %v1231_v37  ;;  %v1212_v14 = vadd.f32 %v1673_v32, %v1115_v35 }
 0x164   :  { %v1118_v48 = vadd.f32 %v1626_v47, %v1021_v11  ;;  %1270 = vxpose.xlu0.b32.cont [14/16] (narrow) %v1254_v12, 32  ;;  %v1232_v45 = vmax.f32 %v1212_v14, 0.0 }
 0x166   :  { %v1255_v0 = vmul.f32 %v2346_v41, %v1232_v45  ;;  %v1215_v2 = vadd.f32 %v1674_v42, %v1118_v48 }
 0x168   :  { %1271 = vxpose.xlu0.b32.cont [15/16] (narrow) %v1255_v0, 32  ;;  %v1233_v50 = vmax.f32 %v1215_v2, 0.0 }
 0x16a   :  { %v1256_v34 = vmul.f32 %v2346_v41, %v1233_v50 }
 0x16c   :  { %1272 = vxpose.xlu0.b32.end [16/16] (narrow) %v1256_v34, 32 }
 0x1ac   :  { %v1273_v49 = vpop.trf.xlu0 }
 0x1b0   :  { %v1274_v51 = vpop.trf.xlu0 }
 0x1b1   :  { %v1289_v29 = vadd.f32 %v1274_v51, %v1273_v49 }
 0x1b4   :  { %v1275_v54 = vpop.trf.xlu0 }
 0x1b5   :  { %v1290_v31 = vadd.f32 %v1289_v29, %v1275_v54 }
 0x1b8   :  { %v1276_v56 = vpop.trf.xlu0 }
 0x1b9   :  { %v1291_v16 = vadd.f32 %v1290_v31, %v1276_v56 }
 0x1bb   :  { %v1292_v18 = vrot.slane %v1291_v16, 4 }
 0x1bd   :  { %v1293_v32 = vadd.f32 %v1292_v18, %v1291_v16 }
 0x1bf   :  { %v1294_v61 = vrot.slane %v1293_v32, 2 }
 0x1c1   :  { %v1295_v63 = vadd.f32 %v1294_v61, %v1293_v32 }
 0x1c3   :  { %v1296_v39 = vrot.slane %v1295_v63, 1 }
 0x1c5   :  { %v1297_v13 = vadd.f32 %v1296_v39, %v1295_v63 }
 0x1c7   :  { %v1300_v15 = vadd.f32 %v1299_v38, %v1297_v13 }
 0x1c9   :  { %v1301_v41 = vsub.f32 0.0, %v1300_v15 }
 0x1cb   :  { %v1302_v53 = vmul.f32 1.442695, %v1301_v41 }
 0x1cd   :  { %1812 = vpow2.f32 %v1302_v53 }
 0x1da   :  { %v1813_v55 = vpop.eup %1812 }
 0x1db   :  { %v1304_v1 = vadd.f32 1.0, %v1813_v55 }
 0x1dd   :  { %1814 = vrcp.f32 %v1304_v1 }
 0x1ea   :  { %v1815_v3 = vpop.eup %1814 }
 0x1eb   :  { %1306 = vst [vmem:[#allocation3] sm:$0x1] %v1815_v3 }
 0x1ec   :  { %1827 = shalt.err (!%p1824_p4)
}
 0x1ed   :  { %1316 = dma.vmem_to_hbm [thread:$0]  %s1314_s18, 16, %s2438_s5, [#allocation4]  }
 0x1ee   :  { %1836 = dma.done.wait [#allocation4], 16  }
 0x1ef   :  { %1837 = vsyncadd [#allocation4], 4294967280 }
 0x1f0   :  { %1320 = vsyncpa [#allocation4], 1 }

</bundles_post_ra>
